<compile_context>
chip_gen: v5e
topology: v5e:2x2
jax: 0.10.0
libtpu: 0.0.40
codegen_flags: <defaults>
</compile_context>

<pallas_src>
import functools

import jax
import jax.numpy as jnp
from jax.experimental import pallas as pl
from jax.experimental.pallas import tpu as pltpu


def _round_up(x, m):
    return (x + m - 1) // m * m


def _decoder_kernel(lat_ref, q_ref, p_ref, o_ref, *,
                    in_lat, hidden, out_dim, n_hidden, mm_dtype):
    """One batch tile of the full MLP.  Activations are (features, TB)."""
    lat = lat_ref[...]                      # (TB, in_lat)  natural layout
    q = q_ref[...]                          # (1, TB)

    # --- unpack the resident parameter slab (all static slices) ---------------
    col = 0
    w_in_lat = p_ref[:, col:col + in_lat]; col += in_lat          # (hidden, in_lat)
    w_hs = []
    for _ in range(n_hidden):
        w_hs.append(p_ref[:, col:col + hidden]); col += hidden     # (hidden, hidden)
    w_out = p_ref[0:out_dim, col:col + hidden]; col += hidden      # (out_dim, hidden)
    w_q = p_ref[:, col:col + 1]; col += 1                          # (hidden, 1)
    b_in = p_ref[:, col:col + 1]; col += 1                         # (hidden, 1)
    b_hs = []
    for _ in range(n_hidden):
        b_hs.append(p_ref[:, col:col + 1]); col += 1               # (hidden, 1)
    b_out = p_ref[0:out_dim, col:col + 1]; col += 1                # (out_dim, 1)

    # --- fc_in with the concat fused:  W_lat @ lat^T + w_q * q + b ------------
    # Contract the last dims of both operands so the natural-layout lat block
    # never needs a wrapper/HBM transpose (same pattern as flash 'bqd,bkd->bqk').
    h = jax.lax.dot_general(
        w_in_lat.astype(mm_dtype), lat.astype(mm_dtype),
        (((1,), (1,)), ((), ())),
        preferred_element_type=jnp.float32)                        # (hidden, TB)
    h = jnp.tanh(h + w_q * q + b_in)                               # f32 VPU/EUP

    # --- hidden layers ---------------------------------------------------------
    for w, b in zip(w_hs, b_hs):
        h = jnp.tanh(
            jnp.dot(w.astype(mm_dtype), h.astype(mm_dtype),
                    preferred_element_type=jnp.float32) + b)

    # --- fc_out (no activation), lane-dense (out_dim, TB) store ----------------
    out = jnp.dot(w_out.astype(mm_dtype), h.astype(mm_dtype),
                  preferred_element_type=jnp.float32) + b_out
    o_ref[...] = out.astype(o_ref.dtype)


def decoder_forward(lat_space, questions, params, *,
                    block_b=8192, use_bf16_matmul=False):
    """JAX wrapper reproducing Decoder.forward semantics.

    lat_space: (B, enc_dim_lat_space) f32
    questions: any shape with exactly B elements (PyTorch does .view(-1, 1))
    Returns (B, dec_out_dim) f32.
    """
    (w_in, b_in), hidden_layers, (w_out, b_out) = params

    lat_space = jnp.asarray(lat_space, jnp.float32)
    q = jnp.asarray(questions, jnp.float32).reshape(-1)

    B, in_lat = lat_space.shape
    n_q = w_in.shape[0] - in_lat
    if n_q != 1:
        raise ValueError(
            "Decoder.forward concatenates exactly one question column; "
            f"fc_in implies dec_num_question_inputs={n_q}")
    if q.shape[0] != B:
        raise ValueError(f"questions must have {B} elements, got {q.shape[0]}")

    hidden = w_in.shape[1]
    out_dim = w_out.shape[1]
    n_hidden = len(hidden_layers)

    # --- pack every weight/bias into one (hidden, C) resident slab -------------
    def as_cols(a):  # pad rows up to `hidden`
        a = jnp.asarray(a, jnp.float32)
        return jnp.pad(a, ((0, hidden - a.shape[0]), (0, 0)))

    pieces = [as_cols(w_in[:in_lat, :].T)]                 # W_lat^T   (hidden, in_lat)
    for (w, _) in hidden_layers:
        pieces.append(as_cols(w.T))                        # W_h^T     (hidden, hidden)
    pieces.append(as_cols(w_out.T))                        # W_out^T   (out_dim->hidden, hidden)
    pieces.append(as_cols(w_in[in_lat:, :].T))             # w_q col   (hidden, 1)
    pieces.append(as_cols(jnp.reshape(b_in, (-1, 1))))     # b_in      (hidden, 1)
    for (_, b) in hidden_layers:
        pieces.append(as_cols(jnp.reshape(b, (-1, 1))))    # b_h       (hidden, 1)
    pieces.append(as_cols(jnp.reshape(b_out, (-1, 1))))    # b_out     (out_dim->hidden, 1)
    params_slab = jnp.concatenate(pieces, axis=1)          # (hidden, C), one VMEM tile

    # --- batch tiling -----------------------------------------------------------
    # Lane-dense tile (multiple of 128), large enough to amortize per-step
    # overhead, capped so the grid has >=2 steps (v7x megacore) when B allows.
    rb = _round_up(max(block_b, 128), 128)
    tb_full = _round_up(B, 128)
    tb_half = max(128, _round_up(-(-B // 2), 128))
    TB = min(rb, tb_full, tb_half)
    n_steps = -(-B // TB)
    grid = (n_steps,)

    cost = pl.CostEstimate(
        flops=int(2 * B * (in_lat * hidden + n_hidden * hidden * hidden
                           + hidden * out_dim + hidden)),
        transcendentals=int((n_hidden + 1) * hidden * B),
        bytes_accessed=int(4 * (B * (in_lat + 1 + out_dim) + params_slab.size)),
    )

    kernel = functools.partial(
        _decoder_kernel,
        in_lat=in_lat, hidden=hidden, out_dim=out_dim, n_hidden=n_hidden,
        mm_dtype=jnp.bfloat16 if use_bf16_matmul else jnp.float32)

    out_t = pl.pallas_call(
        kernel,
        out_shape=jax.ShapeDtypeStruct((out_dim, B), jnp.float32),
        grid_spec=pltpu.PrefetchScalarGridSpec(
            num_scalar_prefetch=0,
            grid=grid,
            in_specs=[
                pl.BlockSpec((TB, in_lat), lambda i: (i, 0)),     # lat, natural layout
                pl.BlockSpec((1, TB), lambda i: (0, i)),          # questions row
                pl.BlockSpec(params_slab.shape, lambda i: (0, 0)),  # resident param slab
            ],
            out_specs=pl.BlockSpec((out_dim, TB), lambda i: (0, i)),
        ),
        compiler_params=pltpu.CompilerParams(
            dimension_semantics=("parallel",),
            vmem_limit_bytes=32 * 1024 * 1024,
        ),
        cost_estimate=cost,
    )(lat_space, q.reshape(1, -1), params_slab)

    # Kernel emits lane-dense (out_dim, B); return PyTorch orientation.  A fused
    # consumer could take the (out_dim, B) form directly and skip this transpose.
    return out_t.T


decoder_forward_jit = jax.jit(decoder_forward,
                              static_argnames=("block_b", "use_bf16_matmul"))


def init_decoder_params(key,
                        dec_num_question_inputs=1,
                        enc_dim_lat_space=5,
                        dec_hidden_size=10,
                        dec_num_hidden_layers=2,
                        dec_out_dim=6):
    """Deterministic synthetic init (PyTorch-Linear-like uniform bounds)."""
    in_dim = enc_dim_lat_space + dec_num_question_inputs

    def linear(k, fan_in, fan_out):
        kw, kb = jax.random.split(k)
        bound = 1.0 / jnp.sqrt(fan_in)
        w = jax.random.uniform(kw, (fan_in, fan_out), jnp.float32, -bound, bound)
        b = jax.random.uniform(kb, (1, fan_out), jnp.float32, -bound, bound)
        return w, b

    keys = jax.random.split(key, dec_num_hidden_layers + 2)
    p_in = linear(keys[0], in_dim, dec_hidden_size)
    p_hidden = [linear(keys[1 + i], dec_hidden_size, dec_hidden_size)
                for i in range(dec_num_hidden_layers)]
    p_out = linear(keys[-1], dec_hidden_size, dec_out_dim)
    return (p_in, p_hidden, p_out)


def decoder_ref(lat_space, questions, params):
    """Pure-JAX reference (mirrors the PyTorch forward) for validation."""
    (w_in, b_in), hidden_layers, (w_out, b_out) = params
    q = questions.reshape(-1, 1).astype(lat_space.dtype)
    x = jnp.concatenate((lat_space, q), axis=1)
    h = jnp.tanh(x @ w_in + b_in)
    for w, b in hidden_layers:
        h = jnp.tanh(h @ w + b)
    return h @ w_out + b_out


if __name__ == "__main__":
    key = jax.random.PRNGKey(0)
    kp, kl1, kq1, kl2, kq2 = jax.random.split(key, 5)

    enc_dim_lat_space = 5
    out_dim = 6
    params = init_decoder_params(
        kp,
        dec_num_question_inputs=1,
        enc_dim_lat_space=enc_dim_lat_space,
        dec_hidden_size=10,
        dec_num_hidden_layers=2,
        dec_out_dim=out_dim,
    )

    # Case 1: batch not a multiple of 128 -> 2 grid steps with a ragged last block.
    B1 = 200
    lat1 = jax.random.normal(kl1, (B1, enc_dim_lat_space), jnp.float32)
    q1 = jax.random.normal(kq1, (B1,), jnp.float32)
    out1 = jax.block_until_ready(decoder_forward_jit(lat1, q1, params))
    ref1 = decoder_ref(lat1, q1, params)
    assert out1.shape == (B1, out_dim)
    assert jnp.allclose(out1, ref1, atol=1e-5, rtol=1e-5)

    # Case 2: tiny batch (single partial block, batch < one lane tile).
    B2 = 8
    lat2 = jax.random.normal(kl2, (B2, enc_dim_lat_space), jnp.float32)
    q2 = jax.random.normal(kq2, (B2,), jnp.float32)
    out2 = jax.block_until_ready(decoder_forward_jit(lat2, q2, params))
    ref2 = decoder_ref(lat2, q2, params)
    assert out2.shape == (B2, out_dim)
    assert jnp.allclose(out2, ref2, atol=1e-5, rtol=1e-5)

    print("KERNEL_OK")
</pallas_src>

<mosaic_0001>
module attributes {stable_mosaic.version = 11 : i64} {
  func.func @_decoder_kernel(%arg0: i32, %arg1: memref<128x5xf32, #tpu.memory_space<vmem>>, %arg2: memref<1x128xf32, #tpu.memory_space<vmem>>, %arg3: memref<10x40xf32, #tpu.memory_space<vmem>>, %arg4: memref<6x128xf32, #tpu.memory_space<vmem>>) attributes {dimension_semantics = [#tpu.dimension_semantics<parallel>], iteration_bounds = array<i64: 2>, scalar_prefetch = 0 : i64, scratch_operands = 0 : i64, tpu.core_type = #tpu.core_type<tc>, window_params = [{transform_indices = @transform_0, window_bounds = array<i64: 128, 5>}, {transform_indices = @transform_1, window_bounds = array<i64: 1, 128>}, {pipeline_mode = #tpu.pipeline_mode<synchronous>, transform_indices = @transform_2, window_bounds = array<i64: 10, 40>}, {transform_indices = @transform_3, window_bounds = array<i64: 6, 128>}]} {
    %c0 = arith.constant 0 : index
    %c0_0 = arith.constant 0 : index
    %0 = vector.load %arg1[%c0, %c0_0] : memref<128x5xf32, #tpu.memory_space<vmem>>, vector<128x5xf32>
    %c0_1 = arith.constant 0 : index
    %c0_2 = arith.constant 0 : index
    %1 = vector.load %arg2[%c0_1, %c0_2] : memref<1x128xf32, #tpu.memory_space<vmem>>, vector<1x128xf32>
    %c0_3 = arith.constant 0 : index
    %c0_4 = arith.constant 0 : index
    %2 = vector.load %arg3[%c0_3, %c0_4] : memref<10x40xf32, #tpu.memory_space<vmem>>, vector<10x5xf32>
    %c0_5 = arith.constant 0 : index
    %c5 = arith.constant 5 : index
    %3 = vector.load %arg3[%c0_5, %c5] : memref<10x40xf32, #tpu.memory_space<vmem>>, vector<10x10xf32>
    %c0_6 = arith.constant 0 : index
    %c15 = arith.constant 15 : index
    %4 = vector.load %arg3[%c0_6, %c15] : memref<10x40xf32, #tpu.memory_space<vmem>>, vector<10x10xf32>
    %c0_7 = arith.constant 0 : index
    %c25 = arith.constant 25 : index
    %5 = vector.load %arg3[%c0_7, %c25] : memref<10x40xf32, #tpu.memory_space<vmem>>, vector<6x10xf32>
    %c0_8 = arith.constant 0 : index
    %c35 = arith.constant 35 : index
    %6 = vector.load %arg3[%c0_8, %c35] : memref<10x40xf32, #tpu.memory_space<vmem>>, vector<10x1xf32>
    %c0_9 = arith.constant 0 : index
    %c36 = arith.constant 36 : index
    %7 = vector.load %arg3[%c0_9, %c36] : memref<10x40xf32, #tpu.memory_space<vmem>>, vector<10x1xf32>
    %c0_10 = arith.constant 0 : index
    %c37 = arith.constant 37 : index
    %8 = vector.load %arg3[%c0_10, %c37] : memref<10x40xf32, #tpu.memory_space<vmem>>, vector<10x1xf32>
    %c0_11 = arith.constant 0 : index
    %c38 = arith.constant 38 : index
    %9 = vector.load %arg3[%c0_11, %c38] : memref<10x40xf32, #tpu.memory_space<vmem>>, vector<10x1xf32>
    %c0_12 = arith.constant 0 : index
    %c39 = arith.constant 39 : index
    %10 = vector.load %arg3[%c0_12, %c39] : memref<10x40xf32, #tpu.memory_space<vmem>>, vector<6x1xf32>
    %cst = arith.constant dense<0.000000e+00> : vector<10x128xf32>
    %11 = tpu.matmul %2, %0, %cst {dimension_numbers = #tpu.dot_dimension_numbers<[1], [1], [0], [0], [0, 0, 1, 0], [], []>} : vector<10x5xf32>, vector<128x5xf32>, vector<10x128xf32> -> vector<10x128xf32>
    %12 = vector.broadcast %6 : vector<10x1xf32> to vector<10x128xf32>
    %13 = vector.broadcast %1 : vector<1x128xf32> to vector<10x128xf32>
    %14 = arith.mulf %12, %13 : vector<10x128xf32>
    %15 = arith.addf %11, %14 : vector<10x128xf32>
    %16 = vector.broadcast %7 : vector<10x1xf32> to vector<10x128xf32>
    %17 = arith.addf %15, %16 : vector<10x128xf32>
    %18 = math.tanh %17 : vector<10x128xf32>
    %cst_13 = arith.constant dense<0.000000e+00> : vector<10x128xf32>
    %19 = tpu.matmul %3, %18, %cst_13 {dimension_numbers = #tpu.dot_dimension_numbers<[1], [0], [0], [1], [0, 0, 1, 1], [], []>} : vector<10x10xf32>, vector<10x128xf32>, vector<10x128xf32> -> vector<10x128xf32>
    %20 = vector.broadcast %8 : vector<10x1xf32> to vector<10x128xf32>
    %21 = arith.addf %19, %20 : vector<10x128xf32>
    %22 = math.tanh %21 : vector<10x128xf32>
    %cst_14 = arith.constant dense<0.000000e+00> : vector<10x128xf32>
    %23 = tpu.matmul %4, %22, %cst_14 {dimension_numbers = #tpu.dot_dimension_numbers<[1], [0], [0], [1], [0, 0, 1, 1], [], []>} : vector<10x10xf32>, vector<10x128xf32>, vector<10x128xf32> -> vector<10x128xf32>
    %24 = vector.broadcast %9 : vector<10x1xf32> to vector<10x128xf32>
    %25 = arith.addf %23, %24 : vector<10x128xf32>
    %26 = math.tanh %25 : vector<10x128xf32>
    %cst_15 = arith.constant dense<0.000000e+00> : vector<6x128xf32>
    %27 = tpu.matmul %5, %26, %cst_15 {dimension_numbers = #tpu.dot_dimension_numbers<[1], [0], [0], [1], [0, 0, 1, 1], [], []>} : vector<6x10xf32>, vector<10x128xf32>, vector<6x128xf32> -> vector<6x128xf32>
    %28 = vector.broadcast %10 : vector<6x1xf32> to vector<6x128xf32>
    %29 = arith.addf %27, %28 : vector<6x128xf32>
    %c0_16 = arith.constant 0 : index
    %c0_17 = arith.constant 0 : index
    %30 = vector.load %arg4[%c0_16, %c0_17] : memref<6x128xf32, #tpu.memory_space<vmem>>, vector<6x128xf32>
    tpu.vector_store %arg4[%c0_16, %c0_17], %29 {strides = array<i32>} : memref<6x128xf32, #tpu.memory_space<vmem>>, vector<6x128xf32>,
    return
  }
  func.func @transform_0(%arg0: i32) -> (i32, i32) {
    %c0_i32 = arith.constant 0 : i32
    %c0_i32_0 = arith.constant 0 : i32
    return %arg0, %c0_i32 : i32, i32
  }
  func.func @transform_1(%arg0: i32) -> (i32, i32) {
    %c0_i32 = arith.constant 0 : i32
    %c0_i32_0 = arith.constant 0 : i32
    return %c0_i32, %arg0 : i32, i32
  }
  func.func @transform_2(%arg0: i32) -> (i32, i32) {
    %c0_i32 = arith.constant 0 : i32
    %c0_i32_0 = arith.constant 0 : i32
    %c0_i32_1 = arith.constant 0 : i32
    return %c0_i32, %c0_i32_0 : i32, i32
  }
  func.func @transform_3(%arg0: i32) -> (i32, i32) {
    %c0_i32 = arith.constant 0 : i32
    %c0_i32_0 = arith.constant 0 : i32
    return %c0_i32, %arg0 : i32, i32
  }
}

</mosaic_0001>

<bundles_post_ra>
// kernel: decoder_forward.1
= control target key start
LH: loop header
LB: loop body
LE: loop exit
PB: predicated region body
PF: predicated region fallthrough
CT: control target
= control target key end

     0   :  { %8 = vsyncpa [#allocation3], 0  ;;  %s900_s0 = inlined_call_operand.vmem [shape: f32[200,5], index: 0, kind: input, shape index: {}]   ;;  %s901_s1 = inlined_call_operand.vmem [shape: f32[1,200], index: 1, kind: input, shape index: {}]   ;;  %s902_s2 = inlined_call_operand.vmem [shape: f32[10,40], index: 2, kind: input, shape index: {}]   ;;  %s903_s3 = inlined_call_operand.hbm [shape: f32[6,200], index: 3, kind: output, shape index: {}]  }
   0x1   :  { %10 = vsyncpa [#allocation3 + $0x1], 0  ;;  %s732_s12 = smov 0   ;;  %s734_s13 = smov 0  }
   0x2   :  { %s736_s14 = smov 0   ;;  %s738_s15 = smov 0  }
   0x3 LB: > { %s753_s16 = sadd.s32 4294967295, %s702_s15   ;;  %s535_s17 = sadd.s32 4294967294, %s702_s15   ;;  %s702_s15 = sphi %s738_s15, %s909_s15   ;;  %s698_s14 = sphi %s736_s14, %s908_s14   ;;  %s694_s13 = sphi %s734_s13, %s907_s13   ;;  %s690_s12 = sphi %s732_s12, %s906_s12  }
   0x4   : > { %s757_s18 = sadd.s32 1, %s702_s15   ;;  %s96_s19 = sadd.s32 1, %s698_s14 }
   0x5   : > { %s93_s20 = ssub.s32 %s702_s15, %s757_s18  ;;  %p106_p0 = scmp.ne.s32.totalorder %s698_s14, %s694_s13 }
   0x6   : > { %p94_p1 = scmp.eq.s32.totalorder %s93_s20, 0  ;;  %p107_p2 = scmp.eq.s32.totalorder %s753_s16, 1 }
   0x7   : > { %p112_p3 = scmp.ne.s32.totalorder %s694_s13, %s690_s12  ;;  %p113_p4 = scmp.eq.s32.totalorder %s535_s17, 1 }
   0x8   : > { %s768_s21 = scalar_select %p94_p1, %s698_s14, %s96_s19  }
   0x9   : > { %p770_p5 = por %p107_p2, %p106_p0  ;;  %p774_p6 = por %p113_p4, %p112_p3 }
   0xa   : > { %p538_p7 = scmp.ge.s32.totalorder %s702_s15, 1  ;;  %p157_p8 = scmp.lt.s32.totalorder %s702_s15, 3 }
   0xc   : > { %p158_p9 = pnand %p538_p7, %p157_p8 }
   0xd   : > { %s540_s24 = sshll.u32 (!%p158_p9), %s753_s16, 4  ;;  %p202_p11 = scmp.lt.s32.totalorder (!%p158_p9), %s753_s16, 1 }
   0xe   : > { %161 = sbr.rel (%p158_p9) target bundleno = 669 (0x29d), region = 32  ;;  %p193_p10 = scmp.lt.s32.totalorder (!%p158_p9), %s540_s24, 24 }
   0xf   : > { %s705_s8 = smov (!%p158_p9), 123   ;;  %s707_s11 = smov (!%p158_p9), 113  }
  0x10   : > { %s185_s26 = sand.u32 (!%p158_p9), 1, %s694_s13   ;;  %s660_s17 = scalar_lea.hbm (!%p158_p9), %s903_s3, 16 }
  0x11   : > { %s539_s27 = sshll.u32 (!%p158_p9), %s185_s26, 3 }
  0x13   : > { %s911_s24 = smov (!%p193_p10, %s540_s24), 24  ;;  %vm240_vm0 = vcmask 39936   ;;  %v813_v8 = vld [vmem:[%s902_s2] sm:$0xff]  ;;  %v704_v10 = vmov 35   ;;  %v820_v11 = vld [vmem:[%s902_s2 + $0x8] sm:$0x3] }
  0x14   : > { %s541_s25 = sshll.u32 %s911_s24, 3  ;;  %619 = vset.pattern.permute.xlu0 %v704_v10  ;;  %336 = vrot.lane.b32.xlu2 %v813_v8, %s705_s8  ;;  %v706_v13 = vmov 36   ;;  %v708_v25 = vmov 37   ;;  %vm345_vm1 = vcmask 1041408   ;;  %vm340_vm2 = vcmask 80896  }
  0x15   : > { %s784_s28 = scalar_lea.vmem %s900_s0, %s541_s25  ;;  %232 = vperm.xlu0 %619, %v820_v11   ;;  %620 = vset.pattern.permute.xlu1 %v706_v13  ;;  %v224_v38 = vld [vmem:[%s902_s2] sm:$0x3f]  ;;  %v709_v39 = vmov 38   ;;  %s710_s25 = smov 103   ;;  %v711_v50 = vmov 39  }
  0x16   : > { %v220_v0 = vld [vmem:[%s784_s28 + $0x78] sm:$0xff]  ;;  %v219_v1 = vld [vmem:[%s784_s28 + $0x70] sm:$0xff]  ;;  %v218_v2 = vld [vmem:[%s784_s28 + $0x68] sm:$0xff]  ;;  %s800_s29 = scalar_select %p202_p11, %s753_s16, 1  ;;  %321 = vperm.xlu1 %620, %v820_v11   ;;  %623 = vset.pattern.permute.xlu2 %v709_v39 }
  0x17   : > { %542 = vmatpush.xpose.msk.msra.mxu0 %vm240_vm0, %v220_v0  ;;  %v217_v3 = vld [vmem:[%s784_s28 + $0x60] sm:$0xff]  ;;  %v216_v4 = vld [vmem:[%s784_s28 + $0x58] sm:$0xff]  ;;  %v215_v5 = vld [vmem:[%s784_s28 + $0x50] sm:$0xff] }
  0x18   : > { %v214_v6 = vld [vmem:[%s784_s28 + $0x48] sm:$0xff]  ;;  %s204_s5 = scalar_lea.vmem %s901_s1, %s800_s29  ;;  %v213_v7 = vld [vmem:[%s784_s28 + $0x40] sm:$0xff]  ;;  %v212_v9 = vld [vmem:[%s784_s28 + $0x38] sm:$0xff] }
  0x19   : > { %v211_v12 = vld [vmem:[%s784_s28 + $0x30] sm:$0xff]  ;;  %v210_v14 = vld [vmem:[%s784_s28 + $0x28] sm:$0xff]  ;;  %v209_v15 = vld [vmem:[%s784_s28 + $0x20] sm:$0xff] }
  0x1a   : > { %v208_v16 = vld [vmem:[%s784_s28 + $0x18] sm:$0xff]  ;;  %v207_v17 = vld [vmem:[%s784_s28 + $0x10] sm:$0xff]  ;;  %v206_v18 = vld [vmem:[%s784_s28 + $0x8] sm:$0xff] }
  0x1b   : > { %543 = vmatpush.xpose.msk.msra.mxu0 %vm240_vm0, %v219_v1  ;;  %v205_v19 = vld [vmem:[%s784_s28] sm:$0xff]  ;;  %s569_s28 = sshll.u32 %s753_s16, 3 }
  0x1c   : > { %338 = vrot.lane.b32.xlu2 %v820_v11, %s705_s8  ;;  %v627_v22 = vld [vmem:[%s204_s5] ss:$0 sm:$0xff]  ;;  %s462_s4 = scalar_lea.hbm %s903_s3, %s569_s28  ;;  %s187_s5 = scalar_lea.vmem [#allocation2], %s539_s27 }
  0x1d   : > { %227 = vperm.xlu0 %619, %v813_v8   ;;  %s464_s6 = sshll.u32 %s187_s5, 4  ;;  %s466_s7 = sshll.u32 %s462_s4, 4  ;;  %s465_s6 = int_to_ptr.vmem [resolvable:$true] %s464_s6  ;;  %s467_s7 = int_to_ptr.hbm [resolvable:$true] %s466_s7 }
  0x1e   : > { %317 = vperm.xlu1 %620, %v813_v8   ;;  %s452_s8 = scalar_lea.sflag [#allocation3], %s185_s26  ;;  %s654_s9 = sshra.s32 %s467_s7, 4  ;;  %s655_s9 = int_to_ptr.hbm [resolvable:$true] %s654_s9 }
  0x1f   : > { %544 = vmatpush.xpose.msk.msra.mxu0 %vm240_vm0, %v218_v2  ;;  %s656_s10 = scalar_lea.hbm %s655_s9, 8  ;;  %p661_p1 = scmp.lt.s32.totalorder %s655_s9, %s903_s3 }
  0x20   : > { %p657_p12 = scmp.ne.s32.totalorder %s655_s9, %s656_s10  ;;  %p662_p2 = scmp.lt.s32.totalorder %s660_s17, %s656_s10 }
  0x22   : > { %p658_p13 = pnand %p657_p12, %p770_p5  ;;  %p663_p3 = por %p662_p2, %p661_p1 }
  0x23   : > { %545 = vmatpush.xpose.msk.msra.mxu0 %vm240_vm0, %v217_v3 }
  0x24   : > { %382 = vrot.lane.b32.xlu2 %v813_v8, %s707_s11  ;;  %p659_p0 = pneg %p658_p13 }
  0x25   : > { %621 = vset.pattern.permute.xlu0 %v708_v25 }
  0x26   : > { %622 = vset.pattern.permute.xlu1 %v708_v25  ;;  %333 = vperm.xlu0 %621, %v820_v11   ;;  %p664_p4 = pnand %p663_p3, %p659_p0 }
  0x27   : > { %546 = vmatpush.xpose.msk.msra.mxu0 %vm240_vm0, %v216_v4  ;;  %329 = vperm.xlu1 %622, %v813_v8  }
  0x2b   : > { %547 = vmatpush.xpose.msk.msra.mxu0 %vm240_vm0, %v215_v5 }
  0x2c   : > { %379 = vperm.xlu2 %623, %v820_v11  }
  0x2e   : > { %624 = vset.pattern.permute.xlu0 %v709_v39 }
  0x2f   : > { %548 = vmatpush.xpose.msk.msra.mxu0 %vm240_vm0, %v214_v6  ;;  %384 = vrot.lane.b32.xlu1 %v820_v11, %s707_s11 }
  0x30   : > { %375 = vperm.xlu0 %624, %v813_v8  }
  0x33   : > { %549 = vmatpush.xpose.msk.msra.mxu0 %vm240_vm0, %v213_v7 }
  0x34   : > { %625 = vset.pattern.permute.xlu2 %v711_v50 }
  0x35   : > { %420 = vperm.xlu2 %625, %v224_v38  }
  0x37   : > { %550 = vmatpush.xpose.msk.msra.mxu0 %vm240_vm0, %v212_v9  ;;  %423 = vrot.lane.b32.xlu1 %v224_v38, %s710_s25 }
  0x38   : > { %626 = vset.pattern.permute.xlu0 %v711_v50 }
  0x3b   : > { %551 = vmatpush.xpose.msk.msra.mxu0 %vm240_vm0, %v211_v12 }
  0x3f   : > { %552 = vmatpush.xpose.msk.msra.mxu0 %vm240_vm0, %v210_v14 }
  0x43   : > { %553 = vmatpush.xpose.msk.msra.mxu0 %vm240_vm0, %v209_v15 }
  0x47   : > { %554 = vmatpush.xpose.msk.msra.mxu0 %vm240_vm0, %v208_v16 }
  0x4b   : > { %555 = vmatpush.xpose.msk.msra.mxu0 %vm240_vm0, %v207_v17 }
  0x4f   : > { %556 = vmatpush.xpose.msk.msra.mxu0 %vm240_vm0, %v206_v18 }
  0x53   : > { %557 = vmatpush.xpose.msk.msra.mxu0 %vm240_vm0, %v205_v19 }
  0x56   : > { %558 = vmatmul.msk.f32.vlgmr.msra.gmra.mxu0 %vm240_vm0, %v813_v8 }
  0x5e   : > { %559 = vmatmul.msk.f32.gmra.mxu0 %vm240_vm0, %v820_v11 }
  0x6e   : > { %v337_v34 = vpop.permute.xlu2 %336 }
  0x76   : > { %v339_v37 = vpop.permute.xlu2 %338 }
  0x7e   : > { %v383_v47 = vpop.permute.xlu2 %382 }
  0x86   : > { %v380_v53 = vpop.permute.xlu2 %379 }
  0x87   : > { %v233_v20 = vpop.permute.xlu0 %232 }
  0x88   : > { %v322_v21 = vpop.permute.xlu1 %321  ;;  %v239_v27 = vmul.f32 %v627_v22, %v233_v20 }
  0x8f   : > { %v228_v23 = vpop.permute.xlu0 %227  ;;  %v421_v60 = vpop.permute.xlu2 %420 }
  0x90   : > { %v238_v26 = vmul.f32 %v627_v22, %v228_v23  ;;  %v318_v29 = vpop.permute.xlu1 %317 }
  0x98   : > { %v334_v42 = vpop.permute.xlu0 %333 }
  0x99   : > { %v330_v41 = vpop.permute.xlu1 %329 }
  0xa1   : > { %v385_v49 = vpop.permute.xlu1 %384 }
  0xa2   : > { %v376_v52 = vpop.permute.xlu0 %375 }
  0xa9   : > { %v424_v58 = vpop.permute.xlu1 %423 }
  0xd3   : > { %v310_v24 = vpop.f32.mrf.mxu0 }
  0xd4   : > { %v311_v28 = vadd.f32 %v310_v24, %v238_v26 }
  0xd6   : > { %v324_v32 = vadd.f32 %v318_v29, %v311_v28 }
  0xdb   : > { %v313_v30 = vpop.f32.mrf.mxu0 }
  0xdc   : > { %v314_v31 = vadd.f32 %v313_v30, %v239_v27 }
  0xde   : > { %v325_v33 = vadd.f32 %v322_v21, %v314_v31 }
  0xe0   : > { %628 = vtanh.f32 %v325_v33 }
  0xe1   : > { %630 = vtanh.f32 %v324_v32 }
  0xe6   : > { %v629_v35 = vpop.eup %628 }
  0xe7   : > { %560 = vmatpush.msk.msra.mxu1 %vm345_vm1, %v629_v35  ;;  %v631_v36 = vpop.eup %630 }
  0xe9   : > { %364 = vmatpush.msra.mxu1 %v631_v36 }
  0xea   : > { %561 = vmatmul.msk.f32.vlgmr.msra.gmra.mxu1 %vm340_vm2, %v337_v34 }
  0xf2   : > { %562 = vmatmul.msk.f32.gmra.mxu1 %vm340_vm2, %v339_v37 }
 0x167   : > { %v366_v40 = vpop.f32.mrf.mxu1 }
 0x168   : > { %v367_v44 = vadd.f32 %v366_v40, %v330_v41 }
 0x16f   : > { %v369_v43 = vpop.f32.mrf.mxu1 }
 0x170   : > { %v370_v45 = vadd.f32 %v369_v43, %v334_v42 }
 0x172   : > { %632 = vtanh.f32 %v370_v45 }
 0x173   : > { %634 = vtanh.f32 %v367_v44 }
 0x178   : > { %v633_v46 = vpop.eup %632 }
 0x179   : > { %563 = vmatpush.msk.msra.mxu2 %vm345_vm1, %v633_v46  ;;  %v635_v48 = vpop.eup %634 }
 0x17b   : > { %408 = vmatpush.msra.mxu2 %v635_v48 }
 0x17c   : > { %564 = vmatmul.msk.f32.vlgmr.msra.gmra.mxu2 %vm340_vm2, %v383_v47 }
 0x184   : > { %565 = vmatmul.msk.f32.gmra.mxu2 %vm340_vm2, %v385_v49 }
 0x1ff   : > { %v410_v51 = vpop.f32.mrf.mxu2 }
 0x200   : > { %v411_v55 = vadd.f32 %v410_v51, %v376_v52 }
 0x207   : > { %v413_v54 = vpop.f32.mrf.mxu2 }
 0x208   : > { %v414_v56 = vadd.f32 %v413_v54, %v380_v53 }
 0x20a   : > { %636 = vtanh.f32 %v414_v56 }
 0x20b   : > { %638 = vtanh.f32 %v411_v55 }
 0x210   : > { %v637_v57 = vpop.eup %636 }
 0x211   : > { %566 = vmatpush.msk.msra.mxu3 %vm345_vm1, %v637_v57  ;;  %v639_v59 = vpop.eup %638 }
 0x213   : > { %445 = vmatpush.msra.mxu3 %v639_v59 }
 0x214   : > { %567 = vmatmul.msk.f32.vlgmr.msra.gmra.mxu3 %vm340_vm2, %v424_v58 }
 0x297   : > { %v447_v61 = vpop.f32.mrf.mxu3 }
 0x298   : > { %v448_v62 = vadd.f32 %v447_v61, %v421_v60 }
 0x29a   : > { %450 = vst [vmem:[%s187_s5] sm:$0x3f] %v448_v62 }
 0x29b   : > { %667 = shalt.err (!%p664_p4)
}
 0x29c   : > { %572 = dma.vmem_to_hbm [thread:$0]  (%p770_p5), %s465_s6, 128, %s467_s7, %s452_s8  }
 0x29d PF: > { %p578_p7 = scmp.ge.s32.totalorder %s702_s15, 2  ;;  %s478_s24 = sand.u32 1, %s690_s12  }
 0x29e   : > { %s479_s25 = scalar_lea.sflag [#allocation3], %s478_s24 }
 0x29f   : > { %p575_p8 = pnand %p578_p7, %p774_p6 }
 0x2a1   : > { %p576_p9 = pneg %p575_p8 }
 0x2a3   : > { %685 = dma.done.wait (%p576_p9), %s479_s25, 128  }
 0x2a4   : > { %687 = vsyncadd (%p576_p9), %s479_s25, 4294967168  ;;  %p13_p10 = scmp.ge.s32.totalorder %s757_s18, 4   ;;  %s906_s12 = smov %s694_s13 }
 0x2a5   : > { %s907_s13 = smov %s698_s14  ;;  %s908_s14 = smov %s768_s21 }
 0x2a6   : > { %s909_s15 = smov %s757_s18  ;;  %15 = sbr.rel (!%p13_p10) target bundleno = 3 (0x3), region = 70 }
 0x2ab   :  { %485 = vsyncpa [#allocation3], 1 }
 0x2ac   :  { %487 = vsyncpa [#allocation3 + $0x1], 1 }

</bundles_post_ra>
